<compile_context>
chip_gen: v7x
topology: tpu7x:2x2x1
jax: 0.10.0
libtpu: 0.0.40
codegen_flags: <defaults>
</compile_context>

<pallas_src>
import functools
import re

import jax
import jax.numpy as jnp
import numpy as np
from jax.experimental import pallas as pl
from jax.experimental.pallas import tpu as pltpu


# --------------------------------------------------------------------------- #
# Kernel
# --------------------------------------------------------------------------- #
def _sigmoid_kernel(x_ref, o_ref, *, compute_dtype):
    # compute_dtype is f32 on v5e / for f32 inputs (no-op cast), and bf16 on
    # v6e/v7x for bf16 inputs (native bf16 VPU/EUP path, half the vreg traffic).
    x = x_ref[...].astype(compute_dtype)
    o_ref[...] = jax.nn.sigmoid(x).astype(o_ref.dtype)


# --------------------------------------------------------------------------- #
# Generation detection & tuning knobs
# --------------------------------------------------------------------------- #
def _tpu_generation() -> int:
    """Best-effort TPU generation (5, 6, 7, ...); 0 if unknown."""
    try:
        kind = jax.devices()[0].device_kind.lower()
    except Exception:
        return 0
    m = re.search(r"(?:v|tpu)\s*(\d+)", kind)
    if m:
        return int(m.group(1))
    return 0


def _default_block_bytes(gen: int) -> int:
    if gen >= 7:
        # 3.2 TB/s HBM: 2 MiB blocks leave ~25% grid-step overhead; 6 MiB blocks
        # (24 MiB in flight double-buffered) stay under the 32 MiB scoped default.
        return 6 * 1024 * 1024
    if gen == 6:
        # 85% -> 86%+ of roofline going ~1 MiB -> ~4 MiB; free under 32 MiB scoped.
        return 4 * 1024 * 1024
    # v5e / unknown: 16 MiB default scoped VMEM -> keep 4 buffers at ~8 MiB total.
    return 2 * 1024 * 1024


# --------------------------------------------------------------------------- #
# Wrapper
# --------------------------------------------------------------------------- #
def pallas_sigmoid(x: jax.Array, *, target_block_bytes: int | None = None) -> jax.Array:
    """Elementwise sigmoid via a Pallas TPU kernel. Works on any shape/dtype."""
    orig_shape = x.shape
    orig_dtype = x.dtype
    total = x.size
    if total == 0:
        return x

    gen = _tpu_generation()
    if target_block_bytes is None:
        target_block_bytes = _default_block_bytes(gen)

    # Compute dtype: native bf16 on v6e/v7x, otherwise f32 (no-op for f32 input).
    if orig_dtype == jnp.float32:
        compute_dtype = jnp.float32
    elif orig_dtype == jnp.bfloat16 and gen >= 6:
        compute_dtype = jnp.bfloat16
    else:
        compute_dtype = jnp.float32

    kernel = functools.partial(_sigmoid_kernel, compute_dtype=compute_dtype)

    LANE = 128
    elem_bytes = jnp.dtype(orig_dtype).itemsize
    # Sublane multiple matching the packed tile of the dtype (8 / 16 / 32).
    sublane = {4: 8, 2: 16, 1: 32}.get(elem_bytes, 8)

    rem = total % LANE
    main = total - rem

    if main == 0:
        # Fewer than 128 elements: a kernel launch is pure overhead.
        return jax.nn.sigmoid(x.astype(compute_dtype)).astype(orig_dtype)

    # ----- build the lane-dense 2D slab for the 128-aligned prefix ----------- #
    x_flat = None
    if (rem == 0 and x.ndim >= 2 and orig_shape[-1] % LANE == 0
            and orig_shape[-1] * elem_bytes <= target_block_bytes):
        # Last dim is already lane-aligned: keep it as the lane axis and only
        # collapse the leading dims (avoids a full-tensor relayout reshape).
        width = orig_shape[-1]
        x2d = x.reshape(-1, width)
    else:
        x_flat = x.reshape(-1)
        x_main = x_flat[:main] if rem else x_flat
        width = LANE
        for w in (4096, 2048, 1024, 512, 256):
            if main % w == 0:
                width = w
                break
        x2d = x_main.reshape(-1, width)

    rows = main // width

    # Row-block sized so one input block ~= target_block_bytes; in+out double-
    # buffered stays ~4x that, under the default scoped VMEM for every gen.
    tile_rows = (target_block_bytes // (width * elem_bytes)) // sublane * sublane
    tile_rows = max(sublane, tile_rows)
    if tile_rows > rows:
        tile_rows = rows  # full-extent block is always a legal block shape

    grid = (pl.cdiv(rows, tile_rows),)  # partial last block: padded reads, masked writes

    if gen >= 7:
        # v7x has 2 TensorCores per chip: split the row-blocks across both TCs.
        dim_sem = (pltpu.CORE_PARALLEL,)
    else:
        dim_sem = ("parallel",)

    out2d = pl.pallas_call(
        kernel,
        out_shape=jax.ShapeDtypeStruct((rows, width), orig_dtype),
        grid_spec=pltpu.PrefetchScalarGridSpec(
            num_scalar_prefetch=0,
            grid=grid,
            in_specs=[pl.BlockSpec((tile_rows, width), lambda i: (i, 0))],
            out_specs=pl.BlockSpec((tile_rows, width), lambda i: (i, 0)),
        ),
        compiler_params=pltpu.CompilerParams(dimension_semantics=dim_sem),
    )(x2d)

    if rem:
        # <128-element tail: handled with a tiny plain-JAX sigmoid instead of a
        # full-tensor pad + slice round-trip (saves two extra HBM passes).
        tail = jax.nn.sigmoid(x_flat[main:].astype(compute_dtype)).astype(orig_dtype)
        out_flat = jnp.concatenate([out2d.reshape(-1), tail])
        return out_flat.reshape(orig_shape)

    return out2d.reshape(orig_shape)


# --------------------------------------------------------------------------- #
# Demo / correctness checks
# --------------------------------------------------------------------------- #
if __name__ == "__main__":
    key = jax.random.PRNGKey(0)
    # Small NCHW activation, consistent with a conv-backbone Sigmoid usage.
    x = jax.random.normal(key, (2, 4, 16, 16), dtype=jnp.float32)

    y = jax.block_until_ready(pallas_sigmoid(x))
    y_ref = jax.nn.sigmoid(x)
    assert y.shape == x.shape and y.dtype == x.dtype
    np.testing.assert_allclose(np.asarray(y), np.asarray(y_ref), atol=1e-6, rtol=1e-6)

    # Element count < 128 (pure-JAX tiny path).
    x2 = jax.random.normal(jax.random.PRNGKey(1), (3, 5, 7), dtype=jnp.float32)
    y2 = jax.block_until_ready(pallas_sigmoid(x2))
    np.testing.assert_allclose(np.asarray(y2), np.asarray(jax.nn.sigmoid(x2)),
                               atol=1e-6, rtol=1e-6)

    # Element count > 128 but not a multiple of 128 (kernel prefix + tail path).
    x4 = jax.random.normal(jax.random.PRNGKey(3), (17, 33), dtype=jnp.float32)
    y4 = jax.block_until_ready(pallas_sigmoid(x4))
    np.testing.assert_allclose(np.asarray(y4), np.asarray(jax.nn.sigmoid(x4)),
                               atol=1e-6, rtol=1e-6)

    # bf16 input (native bf16 compute on v6e/v7x, f32 upcast on v5e).
    x3 = jax.random.normal(jax.random.PRNGKey(2), (2, 8, 16, 16), dtype=jnp.bfloat16)
    y3 = jax.block_until_ready(pallas_sigmoid(x3))
    assert y3.dtype == jnp.bfloat16 and y3.shape == x3.shape
    np.testing.assert_allclose(np.asarray(y3, dtype=np.float32),
                               np.asarray(jax.nn.sigmoid(x3), dtype=np.float32),
                               atol=1e-2, rtol=1e-2)

    print("KERNEL_OK")
</pallas_src>

<mosaic_0001>
module attributes {stable_mosaic.version = 11 : i64} {
  func.func @_sigmoid_kernel(%arg0: i32, %arg1: memref<1x2048xf32, #tpu.memory_space<vmem>>, %arg2: memref<1x2048xf32, #tpu.memory_space<vmem>>) attributes {dimension_semantics = [#tpu.dimension_semantics<parallel>], iteration_bounds = array<i64: 1>, scalar_prefetch = 0 : i64, scratch_operands = 0 : i64, tpu.core_type = #tpu.core_type<tc>, window_params = [{transform_indices = @transform_0, window_bounds = array<i64: 1, 2048>}, {transform_indices = @transform_1, window_bounds = array<i64: 1, 2048>}]} {
    %c0 = arith.constant 0 : index
    %c0_0 = arith.constant 0 : index
    %0 = vector.load %arg1[%c0, %c0_0] : memref<1x2048xf32, #tpu.memory_space<vmem>>, vector<1x2048xf32>
    %1 = arith.negf %0 : vector<1x2048xf32>
    %2 = math.exp %1 : vector<1x2048xf32>
    %cst = arith.constant 1.000000e+00 : f32
    %3 = vector.broadcast %cst : f32 to vector<1x2048xf32>
    %4 = arith.addf %3, %2 : vector<1x2048xf32>
    %5 = arith.divf %3, %4 : vector<1x2048xf32>
    %c0_1 = arith.constant 0 : index
    %c0_2 = arith.constant 0 : index
    %6 = vector.load %arg2[%c0_1, %c0_2] : memref<1x2048xf32, #tpu.memory_space<vmem>>, vector<1x2048xf32>
    tpu.vector_store %arg2[%c0_1, %c0_2], %5 {strides = array<i32>} : memref<1x2048xf32, #tpu.memory_space<vmem>>, vector<1x2048xf32>,
    return
  }
  func.func @transform_0(%arg0: i32) -> (i32, i32) {
    %c0_i32 = arith.constant 0 : i32
    %c0_i32_0 = arith.constant 0 : i32
    return %arg0, %c0_i32 : i32, i32
  }
  func.func @transform_1(%arg0: i32) -> (i32, i32) {
    %c0_i32 = arith.constant 0 : i32
    %c0_i32_0 = arith.constant 0 : i32
    return %arg0, %c0_i32 : i32, i32
  }
}

</mosaic_0001>

<bundles_post_ra>
// kernel: tpu_custom_call.1
= control target key start
LH: loop header
LB: loop body
LE: loop exit
PB: predicated region body
PF: predicated region fallthrough
CT: control target
= control target key end

     0   :  { %6 = vsyncpa [#allocation3], 0  ;;  %s148_s0 = inlined_call_operand.hbm [shape: f32[1,2048], index: 0, kind: input, shape index: {}]   ;;  %s149_s1 = inlined_call_operand.hbm [shape: f32[1,2048], index: 1, kind: output, shape index: {}]  }
   0x1   :  { %7 = vsyncpa [#allocation4], 0  ;;  %s112_s6 = smov [#allocation2]   ;;  %s64_s10 = scalar_lea.hbm %s148_s0, 256 }
   0x2   :  { %s14_s7 = sshll.u32 %s112_s6, 4  ;;  %p65_p0 = scmp.ne.s32.totalorder %s148_s0, %s64_s10  ;;  %s15_s7 = int_to_ptr.vmem [resolvable:$true] %s14_s7 }
   0x3   :  { %p68_p1 = scmp.lt.u32.totalorder %s64_s10, %s148_s0 }
   0x5   :  { %p70_p2 = pnand %p68_p1, %p65_p0 }
   0x7   :  { %73 = shalt.err (!%p70_p2)
}
   0x8   :  { %s74_s15 = scalar_lea.vmem %s15_s7, 256  ;;  %p79_p4 = scmp.lt.s32.totalorder %s15_s7, %s15_s7 }
   0x9   :  { %p75_p3 = scmp.ne.s32.totalorder %s15_s7, %s74_s15  ;;  %p80_p5 = scmp.lt.s32.totalorder %s74_s15, %s74_s15 }
   0xb   :  { %p81_p6 = por %p80_p5, %p79_p4 }
   0xd   :  { %p82_p7 = pnand %p81_p6, %p75_p3 }
   0xf   :  { %85 = shalt.err (!%p82_p7)
}
  0x10   :  { %17 = dma.hbm_to_vmem [thread:$0]  %s148_s0, 256, %s15_s7, [#allocation3]  }
  0x11   :  { %108 = dma.done.wait [#allocation3], 256  }
  0x12   :  { %109 = vsyncadd [#allocation3], 4294967040  ;;  %v21_v0 = vld [vmem:[#allocation2] sm:$0xff]  ;;  %v22_v1 = vld [vmem:[#allocation2 + $0x8] sm:$0xff]  ;;  %s113_s18 = smov [#allocation5]  }
  0x13   :  { %v52_v2 = vmul.f32 -1.442695, %v21_v0  ;;  %v53_v3 = vmul.f32 -1.442695, %v22_v1  ;;  %s43_s19 = sshll.u32 %s113_s18, 4  ;;  %s44_s19 = int_to_ptr.vmem [resolvable:$true] %s43_s19 }
  0x14   :  { %s86_s0 = scalar_lea.vmem %s44_s19, 256  ;;  %p91_p9 = scmp.lt.s32.totalorder %s44_s19, %s44_s19 }
  0x15   :  { %56 = vpow2.f32 %v52_v2  ;;  %p87_p8 = scmp.ne.s32.totalorder %s44_s19, %s86_s0  ;;  %p92_p10 = scmp.lt.s32.totalorder %s86_s0, %s86_s0 }
  0x16   :  { %58 = vpow2.f32 %v53_v3 }
  0x17   :  { %p93_p11 = por %p92_p10, %p91_p9 }
  0x19   :  { %p94_p12 = pnand %p93_p11, %p87_p8 }
  0x1f   :  { %v57_v4 = vpop.eup %56 }
  0x20   :  { %v59_v5 = vpop.eup %58  ;;  %v29_v6 = vadd.f32 1.0, %v57_v4 }
  0x21   :  { %v30_v7 = vadd.f32 1.0, %v59_v5 }
  0x22   :  { %60 = vrcp.f32 %v29_v6 }
  0x23   :  { %62 = vrcp.f32 %v30_v7 }
  0x2c   :  { %v61_v8 = vpop.eup %60 }
  0x2d   :  { %v63_v9 = vpop.eup %62  ;;  %35 = vst [vmem:[#allocation5] sm:$0xff] %v61_v8 }
  0x2e   :  { %36 = vst [vmem:[#allocation5 + $0x8] sm:$0xff] %v63_v9 }
  0x2f   :  { %97 = shalt.err (!%p94_p12)
}
  0x30   :  { %s98_s22 = scalar_lea.hbm %s149_s1, 256 }
  0x31   :  { %p99_p13 = scmp.ne.s32.totalorder %s149_s1, %s98_s22  ;;  %p102_p0 = scmp.lt.u32.totalorder %s98_s22, %s149_s1 }
  0x33   :  { %p104_p1 = pnand %p102_p0, %p99_p13 }
  0x35   :  { %107 = shalt.err (!%p104_p1)
}
  0x36   :  { %46 = dma.vmem_to_hbm [thread:$0]  %s44_s19, 256, %s149_s1, [#allocation4]  }
  0x37   :  { %110 = dma.done.wait [#allocation4], 256  }
  0x38   :  { %111 = vsyncadd [#allocation4], 4294967040 }
  0x39   :  { %50 = vsyncpa [#allocation3], 1 }
  0x3a   :  { %51 = vsyncpa [#allocation4], 1 }

</bundles_post_ra>
